<compile_context>
chip_gen: v5e
topology: v5e:2x2
jax: 0.10.0
libtpu: 0.0.40
codegen_flags: <defaults>
</compile_context>

<pallas_src>
import functools

import jax
import jax.numpy as jnp
from jax.experimental import pallas as pl
from jax.experimental.pallas import tpu as pltpu

D_IN = 784
H1, H2, H3 = 256, 128, 64
OUT_REAL = 10          # real number of classes
H3_PAD = 128           # fc3 output lane-padded to 128 (zeros -> exact)
OUT_PAD = 128          # fc4 output lane-padded to 128
NEG_PAD = -1e30        # padded-logit bias: exp() == 0, bf16-representable


def _round_up(n, m):
    return ((n + m - 1) // m) * m


def _cdiv(a, b):
    return (a + b - 1) // b


def classifier_kernel(x_ref, w1_ref, b1_ref, w2_ref, b2_ref,
                      w3_ref, b3_ref, w4_ref, b4_ref, out_ref):
    # Cast the input tile to bf16 in-kernel (MXU-native); avoids a separate
    # wrapper-side HBM cast pass over x.
    x = x_ref[...].astype(jnp.bfloat16)                       # (TB, 784)

    # fc1 + ReLU : bf16 MXU operands, f32 accumulation, f32 elementwise.
    h = jnp.dot(x, w1_ref[...], preferred_element_type=jnp.float32) + b1_ref[...]
    h = jnp.maximum(h, 0.0).astype(jnp.bfloat16)

    # fc2 + ReLU
    h = jnp.dot(h, w2_ref[...], preferred_element_type=jnp.float32) + b2_ref[...]
    h = jnp.maximum(h, 0.0).astype(jnp.bfloat16)

    # fc3 + ReLU (outputs zero-padded 64 -> 128 so h3 is lane-dense; the pad
    # columns are exactly relu(0) = 0 and multiply zero rows of w4).
    h = jnp.dot(h, w3_ref[...], preferred_element_type=jnp.float32) + b3_ref[...]
    h = jnp.maximum(h, 0.0).astype(jnp.bfloat16)

    # fc4 (output padded to 128 lanes; padded bias columns are -1e30 so they
    # contribute exp(...) == 0 to the softmax and never win the max).
    z = jnp.dot(h, w4_ref[...], preferred_element_type=jnp.float32) + b4_ref[...]

    # log_softmax along dim=1 (numerically stable).
    z_max = jnp.max(z, axis=-1, keepdims=True)
    z_shift = z - z_max
    lse = jnp.log(jnp.sum(jnp.exp(z_shift), axis=-1, keepdims=True))
    out_ref[...] = (z_shift - lse).astype(out_ref.dtype)      # bf16 writeback


def prepare_params(params):
    """One-time parameter prep -- call once and reuse across forwards.
    bf16 weights (MXU-native), f32 biases, fc3/fc4 lane padding."""
    w1 = params["w1"].astype(jnp.bfloat16)                                # (784,256)
    w2 = params["w2"].astype(jnp.bfloat16)                                # (256,128)
    w3 = jnp.pad(params["w3"], ((0, 0), (0, H3_PAD - H3))).astype(jnp.bfloat16)
    w4 = jnp.pad(params["w4"],
                 ((0, H3_PAD - H3), (0, OUT_PAD - OUT_REAL))).astype(jnp.bfloat16)
    b1 = params["b1"].reshape(1, H1).astype(jnp.float32)
    b2 = params["b2"].reshape(1, H2).astype(jnp.float32)
    b3 = jnp.pad(params["b3"].reshape(1, H3).astype(jnp.float32),
                 ((0, 0), (0, H3_PAD - H3)))
    b4 = jnp.pad(params["b4"].reshape(1, OUT_REAL).astype(jnp.float32),
                 ((0, 0), (0, OUT_PAD - OUT_REAL)), constant_values=NEG_PAD)
    return dict(w1=w1, b1=b1, w2=w2, b2=b2, w3=w3, b3=b3, w4=w4, b4=b4)


def _choose_tb(B, tb_max):
    """Batch tile: multiple of 16 (layout granularity, not 256 -- the MXU has
    no M-alignment requirement).  Prefer >= 2 tiles so v7x's two TensorCores
    both get work; cap at tb_max to bound VMEM."""
    if B <= 16:
        return B                      # one full-array block (always layout-legal)
    return min(tb_max, _round_up(_cdiv(B, 2), 16))


@functools.partial(jax.jit, static_argnames=("tb_max",))
def classifier_forward(x, prepped, *, tb_max=2048):
    """Forward pass.  `prepped` = prepare_params(params).
    x: (B, ...) floating, flattened to (B, 784) like x.view(B, -1).
    Returns f32 log-probs of shape (B, 10)."""
    B = x.shape[0]
    x = x.reshape(B, -1)
    if x.dtype != jnp.bfloat16:       # keep bf16 inputs as-is; otherwise feed
        x = x.astype(jnp.float32)     # f32 straight in and cast in-kernel
    d_in = x.shape[1]
    assert d_in == D_IN, f"expected flattened dim {D_IN}, got {d_in}"

    TB = _choose_tb(B, tb_max)
    num_tiles = _cdiv(B, TB)
    # x is NOT padded: a ragged last tile is a partial block; its garbage rows
    # only affect output rows >= B, which are sliced off below.
    B_out = num_tiles * TB

    w1, b1 = prepped["w1"], prepped["b1"]
    w2, b2 = prepped["w2"], prepped["b2"]
    w3, b3 = prepped["w3"], prepped["b3"]
    w4, b4 = prepped["w4"], prepped["b4"]

    def const_spec(a):  # weights/biases: same block every step -> VMEM-resident
        return pl.BlockSpec(a.shape, lambda i: (0, 0))

    flops = 2 * B_out * (D_IN * H1 + H1 * H2 + H2 * H3_PAD + H3_PAD * OUT_PAD)
    bytes_accessed = (
        B * d_in * x.dtype.itemsize
        + sum(a.size * a.dtype.itemsize for a in (w1, b1, w2, b2, w3, b3, w4, b4))
        + B_out * OUT_PAD * 2)
    transcendentals = B_out * (OUT_PAD + 1)

    out = pl.pallas_call(
        classifier_kernel,
        out_shape=jax.ShapeDtypeStruct((B_out, OUT_PAD), jnp.bfloat16),
        grid=(num_tiles,),
        in_specs=[
            pl.BlockSpec((TB, d_in), lambda i: (i, 0)),   # x: batch-tiled
            const_spec(w1), const_spec(b1),
            const_spec(w2), const_spec(b2),
            const_spec(w3), const_spec(b3),
            const_spec(w4), const_spec(b4),
        ],
        out_specs=pl.BlockSpec((TB, OUT_PAD), lambda i: (i, 0)),
        compiler_params=pltpu.CompilerParams(
            dimension_semantics=("parallel",),
            vmem_limit_bytes=48 << 20,   # fits TB=2048 with headroom; < v7x 64MiB
        ),
        cost_estimate=pl.CostEstimate(
            flops=flops,
            transcendentals=transcendentals,
            bytes_accessed=bytes_accessed,
        ),
    )(x, w1, b1, w2, b2, w3, b3, w4, b4)

    # Drop padded classes / padded batch rows; upcast the tiny (B,10) to f32.
    return out[:B, :OUT_REAL].astype(jnp.float32)


def init_params(key):
    """Deterministic init mimicking nn.Linear's U(-1/sqrt(in), 1/sqrt(in))."""
    dims = [(D_IN, H1), (H1, H2), (H2, H3), (H3, OUT_REAL)]
    params = {}
    for i, (fan_in, fan_out) in enumerate(dims, start=1):
        key, kw, kb = jax.random.split(key, 3)
        bound = 1.0 / (fan_in ** 0.5)
        params[f"w{i}"] = jax.random.uniform(
            kw, (fan_in, fan_out), jnp.float32, minval=-bound, maxval=bound)
        params[f"b{i}"] = jax.random.uniform(
            kb, (1, fan_out), jnp.float32, minval=-bound, maxval=bound)
    return params


def reference_forward(x, params):
    """Pure-JAX reference with the same bf16-operand / f32-accumulate recipe
    (final log-probs kept f32)."""
    h = x.reshape(x.shape[0], -1).astype(jnp.bfloat16)
    for i in range(1, 4):
        w = params[f"w{i}"].astype(jnp.bfloat16)
        h = jnp.dot(h, w, preferred_element_type=jnp.float32) + params[f"b{i}"]
        h = jnp.maximum(h, 0.0).astype(jnp.bfloat16)
    w4 = params["w4"].astype(jnp.bfloat16)
    z = jnp.dot(h, w4, preferred_element_type=jnp.float32) + params["b4"]
    return jax.nn.log_softmax(z, axis=1)


if __name__ == "__main__":
    params = init_params(jax.random.PRNGKey(0))
    prepped = prepare_params(params)        # one-time weight prep

    key = jax.random.PRNGKey(0)
    # B=8: single full-array block; B=64: two full tiles (megacore path);
    # B=40: two tiles with a ragged (partial-block) last x tile.
    for B in (8, 64, 40):
        key, kx = jax.random.split(key)
        x_img = jax.random.normal(kx, (B, 1, 28, 28), jnp.float32)

        out = jax.block_until_ready(classifier_forward(x_img, prepped))
        ref = reference_forward(x_img, params)

        assert out.shape == (B, OUT_REAL)
        assert bool(jnp.all(jnp.isfinite(out))), f"non-finite output at B={B}"
        # bf16 writeback carries ~0.4% relative error vs the f32 reference.
        assert jnp.allclose(out, ref, atol=3e-2, rtol=2e-2), f"mismatch at B={B}"
        assert jnp.allclose(jnp.sum(jnp.exp(out), axis=1), 1.0, atol=2e-2), \
            f"probs don't sum to 1 at B={B}"

    print("KERNEL_OK")
</pallas_src>

<mosaic_0001>
module attributes {stable_mosaic.version = 11 : i64} {
  func.func @classifier_kernel(%arg0: i32, %arg1: memref<8x784xf32, #tpu.memory_space<vmem>>, %arg2: memref<784x256xbf16, #tpu.memory_space<vmem>>, %arg3: memref<1x256xf32, #tpu.memory_space<vmem>>, %arg4: memref<256x128xbf16, #tpu.memory_space<vmem>>, %arg5: memref<1x128xf32, #tpu.memory_space<vmem>>, %arg6: memref<128x128xbf16, #tpu.memory_space<vmem>>, %arg7: memref<1x128xf32, #tpu.memory_space<vmem>>, %arg8: memref<128x128xbf16, #tpu.memory_space<vmem>>, %arg9: memref<1x128xf32, #tpu.memory_space<vmem>>, %arg10: memref<8x128xbf16, #tpu.memory_space<vmem>>) attributes {dimension_semantics = [#tpu.dimension_semantics<parallel>], iteration_bounds = array<i64: 1>, scalar_prefetch = 0 : i64, scratch_operands = 0 : i64, tpu.core_type = #tpu.core_type<tc>, window_params = [{transform_indices = @transform_0, window_bounds = array<i64: 8, 784>}, {pipeline_mode = #tpu.pipeline_mode<synchronous>, transform_indices = @transform_1, window_bounds = array<i64: 784, 256>}, {pipeline_mode = #tpu.pipeline_mode<synchronous>, transform_indices = @transform_2, window_bounds = array<i64: 1, 256>}, {pipeline_mode = #tpu.pipeline_mode<synchronous>, transform_indices = @transform_3, window_bounds = array<i64: 256, 128>}, {pipeline_mode = #tpu.pipeline_mode<synchronous>, transform_indices = @transform_4, window_bounds = array<i64: 1, 128>}, {pipeline_mode = #tpu.pipeline_mode<synchronous>, transform_indices = @transform_5, window_bounds = array<i64: 128, 128>}, {pipeline_mode = #tpu.pipeline_mode<synchronous>, transform_indices = @transform_6, window_bounds = array<i64: 1, 128>}, {pipeline_mode = #tpu.pipeline_mode<synchronous>, transform_indices = @transform_7, window_bounds = array<i64: 128, 128>}, {pipeline_mode = #tpu.pipeline_mode<synchronous>, transform_indices = @transform_8, window_bounds = array<i64: 1, 128>}, {transform_indices = @transform_9, window_bounds = array<i64: 8, 128>}]} {
    %c0 = arith.constant 0 : index
    %c0_0 = arith.constant 0 : index
    %0 = vector.load %arg1[%c0, %c0_0] : memref<8x784xf32, #tpu.memory_space<vmem>>, vector<8x784xf32>
    %1 = arith.truncf %0 : vector<8x784xf32> to vector<8x784xbf16>
    %c0_1 = arith.constant 0 : index
    %c0_2 = arith.constant 0 : index
    %2 = vector.load %arg2[%c0_1, %c0_2] : memref<784x256xbf16, #tpu.memory_space<vmem>>, vector<784x256xbf16>
    %cst = arith.constant dense<0.000000e+00> : vector<8x256xf32>
    %3 = tpu.matmul %1, %2, %cst {dimension_numbers = #tpu.dot_dimension_numbers<[1], [0], [0], [1], [0, 0, 1, 1], [], []>} : vector<8x784xbf16>, vector<784x256xbf16>, vector<8x256xf32> -> vector<8x256xf32>
    %c0_3 = arith.constant 0 : index
    %c0_4 = arith.constant 0 : index
    %4 = vector.load %arg3[%c0_3, %c0_4] : memref<1x256xf32, #tpu.memory_space<vmem>>, vector<1x256xf32>
    %5 = vector.broadcast %4 : vector<1x256xf32> to vector<8x256xf32>
    %6 = arith.addf %3, %5 : vector<8x256xf32>
    %cst_5 = arith.constant 0.000000e+00 : f32
    %7 = vector.broadcast %cst_5 : f32 to vector<8x256xf32>
    %8 = arith.maximumf %6, %7 : vector<8x256xf32>
    %9 = arith.truncf %8 : vector<8x256xf32> to vector<8x256xbf16>
    %c0_6 = arith.constant 0 : index
    %c0_7 = arith.constant 0 : index
    %10 = vector.load %arg4[%c0_6, %c0_7] : memref<256x128xbf16, #tpu.memory_space<vmem>>, vector<256x128xbf16>
    %cst_8 = arith.constant dense<0.000000e+00> : vector<8x128xf32>
    %11 = tpu.matmul %9, %10, %cst_8 {dimension_numbers = #tpu.dot_dimension_numbers<[1], [0], [0], [1], [0, 0, 1, 1], [], []>} : vector<8x256xbf16>, vector<256x128xbf16>, vector<8x128xf32> -> vector<8x128xf32>
    %c0_9 = arith.constant 0 : index
    %c0_10 = arith.constant 0 : index
    %12 = vector.load %arg5[%c0_9, %c0_10] : memref<1x128xf32, #tpu.memory_space<vmem>>, vector<1x128xf32>
    %13 = vector.broadcast %12 : vector<1x128xf32> to vector<8x128xf32>
    %14 = arith.addf %11, %13 : vector<8x128xf32>
    %cst_11 = arith.constant 0.000000e+00 : f32
    %15 = vector.broadcast %cst_11 : f32 to vector<8x128xf32>
    %16 = arith.maximumf %14, %15 : vector<8x128xf32>
    %17 = arith.truncf %16 : vector<8x128xf32> to vector<8x128xbf16>
    %c0_12 = arith.constant 0 : index
    %c0_13 = arith.constant 0 : index
    %18 = vector.load %arg6[%c0_12, %c0_13] : memref<128x128xbf16, #tpu.memory_space<vmem>>, vector<128x128xbf16>
    %cst_14 = arith.constant dense<0.000000e+00> : vector<8x128xf32>
    %19 = tpu.matmul %17, %18, %cst_14 {dimension_numbers = #tpu.dot_dimension_numbers<[1], [0], [0], [1], [0, 0, 1, 1], [], []>} : vector<8x128xbf16>, vector<128x128xbf16>, vector<8x128xf32> -> vector<8x128xf32>
    %c0_15 = arith.constant 0 : index
    %c0_16 = arith.constant 0 : index
    %20 = vector.load %arg7[%c0_15, %c0_16] : memref<1x128xf32, #tpu.memory_space<vmem>>, vector<1x128xf32>
    %21 = vector.broadcast %20 : vector<1x128xf32> to vector<8x128xf32>
    %22 = arith.addf %19, %21 : vector<8x128xf32>
    %cst_17 = arith.constant 0.000000e+00 : f32
    %23 = vector.broadcast %cst_17 : f32 to vector<8x128xf32>
    %24 = arith.maximumf %22, %23 : vector<8x128xf32>
    %25 = arith.truncf %24 : vector<8x128xf32> to vector<8x128xbf16>
    %c0_18 = arith.constant 0 : index
    %c0_19 = arith.constant 0 : index
    %26 = vector.load %arg8[%c0_18, %c0_19] : memref<128x128xbf16, #tpu.memory_space<vmem>>, vector<128x128xbf16>
    %cst_20 = arith.constant dense<0.000000e+00> : vector<8x128xf32>
    %27 = tpu.matmul %25, %26, %cst_20 {dimension_numbers = #tpu.dot_dimension_numbers<[1], [0], [0], [1], [0, 0, 1, 1], [], []>} : vector<8x128xbf16>, vector<128x128xbf16>, vector<8x128xf32> -> vector<8x128xf32>
    %c0_21 = arith.constant 0 : index
    %c0_22 = arith.constant 0 : index
    %28 = vector.load %arg9[%c0_21, %c0_22] : memref<1x128xf32, #tpu.memory_space<vmem>>, vector<1x128xf32>
    %29 = vector.broadcast %28 : vector<1x128xf32> to vector<8x128xf32>
    %30 = arith.addf %27, %29 : vector<8x128xf32>
    %cst_23 = arith.constant dense<0xFF800000> : vector<8xf32>
    %31 = vector.multi_reduction <maximumf>, %30, %cst_23 [1] : vector<8x128xf32> to vector<8xf32>
    %32 = vector.shape_cast %31 : vector<8xf32> to vector<8x1xf32>
    %33 = vector.broadcast %32 : vector<8x1xf32> to vector<8x128xf32>
    %34 = arith.subf %30, %33 : vector<8x128xf32>
    %35 = math.exp %34 : vector<8x128xf32>
    %cst_24 = arith.constant dense<0.000000e+00> : vector<8xf32>
    %36 = vector.multi_reduction <add>, %35, %cst_24 [1] : vector<8x128xf32> to vector<8xf32>
    %37 = vector.shape_cast %36 : vector<8xf32> to vector<8x1xf32>
    %38 = math.log %37 : vector<8x1xf32>
    %39 = vector.broadcast %38 : vector<8x1xf32> to vector<8x128xf32>
    %40 = arith.subf %34, %39 : vector<8x128xf32>
    %41 = arith.truncf %40 : vector<8x128xf32> to vector<8x128xbf16>
    %c0_25 = arith.constant 0 : index
    %c0_26 = arith.constant 0 : index
    %42 = vector.load %arg10[%c0_25, %c0_26] : memref<8x128xbf16, #tpu.memory_space<vmem>>, vector<8x128xbf16>
    tpu.vector_store %arg10[%c0_25, %c0_26], %41 {strides = array<i32>} : memref<8x128xbf16, #tpu.memory_space<vmem>>, vector<8x128xbf16>,
    return
  }
  func.func @transform_0(%arg0: i32) -> (i32, i32) {
    %c0_i32 = arith.constant 0 : i32
    %c0_i32_0 = arith.constant 0 : i32
    return %arg0, %c0_i32 : i32, i32
  }
  func.func @transform_1(%arg0: i32) -> (i32, i32) {
    %c0_i32 = arith.constant 0 : i32
    %c0_i32_0 = arith.constant 0 : i32
    %c0_i32_1 = arith.constant 0 : i32
    return %c0_i32, %c0_i32_0 : i32, i32
  }
  func.func @transform_2(%arg0: i32) -> (i32, i32) {
    %c0_i32 = arith.constant 0 : i32
    %c0_i32_0 = arith.constant 0 : i32
    %c0_i32_1 = arith.constant 0 : i32
    return %c0_i32, %c0_i32_0 : i32, i32
  }
  func.func @transform_3(%arg0: i32) -> (i32, i32) {
    %c0_i32 = arith.constant 0 : i32
    %c0_i32_0 = arith.constant 0 : i32
    %c0_i32_1 = arith.constant 0 : i32
    return %c0_i32, %c0_i32_0 : i32, i32
  }
  func.func @transform_4(%arg0: i32) -> (i32, i32) {
    %c0_i32 = arith.constant 0 : i32
    %c0_i32_0 = arith.constant 0 : i32
    %c0_i32_1 = arith.constant 0 : i32
    return %c0_i32, %c0_i32_0 : i32, i32
  }
  func.func @transform_5(%arg0: i32) -> (i32, i32) {
    %c0_i32 = arith.constant 0 : i32
    %c0_i32_0 = arith.constant 0 : i32
    %c0_i32_1 = arith.constant 0 : i32
    return %c0_i32, %c0_i32_0 : i32, i32
  }
  func.func @transform_6(%arg0: i32) -> (i32, i32) {
    %c0_i32 = arith.constant 0 : i32
    %c0_i32_0 = arith.constant 0 : i32
    %c0_i32_1 = arith.constant 0 : i32
    return %c0_i32, %c0_i32_0 : i32, i32
  }
  func.func @transform_7(%arg0: i32) -> (i32, i32) {
    %c0_i32 = arith.constant 0 : i32
    %c0_i32_0 = arith.constant 0 : i32
    %c0_i32_1 = arith.constant 0 : i32
    return %c0_i32, %c0_i32_0 : i32, i32
  }
  func.func @transform_8(%arg0: i32) -> (i32, i32) {
    %c0_i32 = arith.constant 0 : i32
    %c0_i32_0 = arith.constant 0 : i32
    %c0_i32_1 = arith.constant 0 : i32
    return %c0_i32, %c0_i32_0 : i32, i32
  }
  func.func @transform_9(%arg0: i32) -> (i32, i32) {
    %c0_i32 = arith.constant 0 : i32
    %c0_i32_0 = arith.constant 0 : i32
    return %arg0, %c0_i32 : i32, i32
  }
}

</mosaic_0001>

<bundles_post_ra>
// kernel: classifier_forward.1
= control target key start
LH: loop header
LB: loop body
LE: loop exit
PB: predicated region body
PF: predicated region fallthrough
CT: control target
= control target key end

     0   :  { %14 = vsyncpa [#allocation3], 0  ;;  %s2678_s0 = inlined_call_operand.vmem [shape: f32[8,784], index: 0, kind: input, shape index: {}]   ;;  %s2679_s1 = inlined_call_operand.vmem [shape: bf16[784,256], index: 1, kind: input, shape index: {}]   ;;  %s2680_s2 = inlined_call_operand.vmem [shape: f32[1,256], index: 2, kind: input, shape index: {}]   ;;  %s2681_s3 = inlined_call_operand.hbm [shape: bf16[256,128], index: 3, kind: input, shape index: {}]   ;;  %s2682_s4 = inlined_call_operand.vmem [shape: f32[1,128], index: 4, kind: input, shape index: {}]   ;;  %s2683_s5 = inlined_call_operand.hbm [shape: bf16[128,128], index: 5, kind: input, shape index: {}]   ;;  %s2684_s6 = inlined_call_operand.vmem [shape: f32[1,128], index: 6, kind: input, shape index: {}]   ;;  %s2685_s7 = inlined_call_operand.hbm [shape: bf16[128,128], index: 7, kind: input, shape index: {}]   ;;  %s2686_s8 = inlined_call_operand.vmem [shape: f32[1,128], index: 8, kind: input, shape index: {}]   ;;  %s2687_s9 = inlined_call_operand.vmem [shape: bf16[8,128], index: 9, kind: output, shape index: {}]  }
   0x1   :  { %15 = vsyncpa [#allocation5], 0  ;;  %s41_s11 = sshll.u32 %s2683_s5, 4  ;;  %s1960_s12 = smov [#allocation4]   ;;  %s42_s11 = int_to_ptr.hbm [resolvable:$true] %s41_s11 }
   0x2   :  { %s43_s13 = sshll.u32 %s1960_s12, 4  ;;  %s26_s16 = sshll.u32 %s2681_s3, 4  ;;  %s44_s13 = int_to_ptr.vmem [resolvable:$true] %s43_s13  ;;  %s27_s16 = int_to_ptr.hbm [resolvable:$true] %s26_s16 }
   0x3   :  { %s1961_s17 = smov 64   ;;  %s1962_s18 = smov 4  }
   0x4   :  { %49 = dma.hbm_to_vmem [thread:$0]  %s42_s11, 1024, %s44_s13, [#allocation5], %s1961_s17, %s1961_s17, %s1962_s18  }
   0x5   :  { %s1963_s19 = smov [#allocation2]   ;;  %s56_s23 = sshll.u32 %s2685_s7, 4  ;;  %s57_s23 = int_to_ptr.hbm [resolvable:$true] %s56_s23 }
   0x6   :  { %s28_s20 = sshll.u32 %s1963_s19, 4  ;;  %s1964_s5 = smov [#allocation6]   ;;  %s29_s20 = int_to_ptr.vmem [resolvable:$true] %s28_s20 }
   0x7   :  { %34 = dma.hbm_to_vmem [thread:$0]  %s27_s16, 2048, %s29_s20, [#allocation3], %s1961_s17, %s1961_s17, %s1962_s18  }
   0x8   :  { %s58_s24 = sshll.u32 %s1964_s5, 4  ;;  %s59_s24 = int_to_ptr.vmem [resolvable:$true] %s58_s24 }
   0x9   :  { %64 = dma.hbm_to_vmem [thread:$0]  %s57_s23, 1024, %s59_s24, [#allocation5], %s1961_s17, %s1961_s17, %s1962_s18  }
   0xa   :  { %1956 = dma.done.wait [#allocation3], 2048  }
   0xb   :  { %1957 = vsyncadd [#allocation3], 4294965248 }
   0xc   :  { %1958 = dma.done.wait [#allocation5], 2048  }
   0xd   :  { %1959 = vsyncadd [#allocation5], 4294965248  ;;  %v1278_v0 = vld [vmem:[%s2679_s1 + $0x70] sm:$0xf]  ;;  %v1757_v1 = vld [vmem:[%s2679_s1 + $0x74] sm:$0xf0] }
   0xe   :  { %v1406_v2 = vld [vmem:[%s2679_s1 + $0x170] sm:$0xf]  ;;  %v1279_v3 = vor.u32 %v1757_v1, %v1278_v0  ;;  %v1789_v4 = vld [vmem:[%s2679_s1 + $0x174] sm:$0xf0]  ;;  %v1270_v11 = vld [vmem:[%s2679_s1 + $0x60] sm:$0xf] }
   0xf   :  { %v1470_v5 = vld [vmem:[%s2679_s1 + $0x1f0] sm:$0xf]  ;;  %v1805_v6 = vld [vmem:[%s2679_s1 + $0x1f4] sm:$0xf0]  ;;  %v1407_v7 = vor.u32 %v1789_v4, %v1406_v2  ;;  %v1755_v13 = vld [vmem:[%s2679_s1 + $0x64] sm:$0xf0] }
  0x10   :  { %v1471_v8 = vor.u32 %v1805_v6, %v1470_v5  ;;  %v1342_v9 = vld [vmem:[%s2679_s1 + $0xf0] sm:$0xf]  ;;  %v1773_v10 = vld [vmem:[%s2679_s1 + $0xf4] sm:$0xf0]  ;;  %692 = vmatpush.bf16.msra.mxu0 %v1279_v3  ;;  %v1398_v14 = vld [vmem:[%s2679_s1 + $0x160] sm:$0xf]  ;;  %v1271_v16 = vor.u32 %v1755_v13, %v1270_v11 }
  0x11   :  { %v1343_v12 = vor.u32 %v1773_v10, %v1342_v9  ;;  %v1787_v15 = vld [vmem:[%s2679_s1 + $0x164] sm:$0xf0]  ;;  %718 = vmatpush.bf16.msra.mxu2 %v1407_v7  ;;  %v1462_v18 = vld [vmem:[%s2679_s1 + $0x1e0] sm:$0xf]  ;;  %v1262_v23 = vld [vmem:[%s2679_s1 + $0x50] sm:$0xf] }
  0x12   :  { %731 = vmatpush.bf16.msra.mxu3 %v1471_v8  ;;  %v1399_v17 = vor.u32 %v1787_v15, %v1398_v14  ;;  %v1803_v19 = vld [vmem:[%s2679_s1 + $0x1e4] sm:$0xf0]  ;;  %v1334_v20 = vld [vmem:[%s2679_s1 + $0xe0] sm:$0xf]  ;;  %v1753_v24 = vld [vmem:[%s2679_s1 + $0x54] sm:$0xf0] }
  0x13   :  { %705 = vmatpush.bf16.msra.mxu1 %v1343_v12  ;;  %v1463_v21 = vor.u32 %v1803_v19, %v1462_v18  ;;  %v1771_v22 = vld [vmem:[%s2679_s1 + $0xe4] sm:$0xf0]  ;;  %v1390_v26 = vld [vmem:[%s2679_s1 + $0x150] sm:$0xf]  ;;  %v1785_v27 = vld [vmem:[%s2679_s1 + $0x154] sm:$0xf0]  ;;  %v1263_v29 = vor.u32 %v1753_v24, %v1262_v23 }
  0x14   :  { %v1335_v25 = vor.u32 %v1771_v22, %v1334_v20  ;;  %v1454_v28 = vld [vmem:[%s2679_s1 + $0x1d0] sm:$0xf]  ;;  %693 = vmatpush.bf16.msra.mxu0 %v1271_v16  ;;  %v1801_v30 = vld [vmem:[%s2679_s1 + $0x1d4] sm:$0xf0]  ;;  %v1391_v33 = vor.u32 %v1785_v27, %v1390_v26  ;;  %v1254_v35 = vld [vmem:[%s2679_s1 + $0x40] sm:$0xf] }
  0x15   :  { %v1326_v31 = vld [vmem:[%s2679_s1 + $0xd0] sm:$0xf]  ;;  %v1769_v32 = vld [vmem:[%s2679_s1 + $0xd4] sm:$0xf0]  ;;  %719 = vmatpush.bf16.msra.mxu2 %v1399_v17  ;;  %v1455_v34 = vor.u32 %v1801_v30, %v1454_v28  ;;  %v1751_v36 = vld [vmem:[%s2679_s1 + $0x44] sm:$0xf0] }
  0x16   :  { %732 = vmatpush.bf16.msra.mxu3 %v1463_v21  ;;  %v1382_v37 = vld [vmem:[%s2679_s1 + $0x140] sm:$0xf]  ;;  %v1327_v38 = vor.u32 %v1769_v32, %v1326_v31  ;;  %v1783_v39 = vld [vmem:[%s2679_s1 + $0x144] sm:$0xf0]  ;;  %v1255_v44 = vor.u32 %v1751_v36, %v1254_v35  ;;  %v1246_v47 = vld [vmem:[%s2679_s1 + $0x30] sm:$0xf] }
  0x17   :  { %706 = vmatpush.bf16.msra.mxu1 %v1335_v25  ;;  %v1446_v40 = vld [vmem:[%s2679_s1 + $0x1c0] sm:$0xf]  ;;  %v1799_v41 = vld [vmem:[%s2679_s1 + $0x1c4] sm:$0xf0]  ;;  %v1383_v45 = vor.u32 %v1783_v39, %v1382_v37  ;;  %v1749_v48 = vld [vmem:[%s2679_s1 + $0x34] sm:$0xf0] }
  0x18   :  { %v1318_v42 = vld [vmem:[%s2679_s1 + $0xc0] sm:$0xf]  ;;  %v1767_v43 = vld [vmem:[%s2679_s1 + $0xc4] sm:$0xf0]  ;;  %694 = vmatpush.bf16.msra.mxu0 %v1263_v29  ;;  %v1447_v46 = vor.u32 %v1799_v41, %v1446_v40  ;;  %v1374_v49 = vld [vmem:[%s2679_s1 + $0x130] sm:$0xf]  ;;  %v1247_v56 = vor.u32 %v1749_v48, %v1246_v47 }
  0x19   :  { %720 = vmatpush.bf16.msra.mxu2 %v1391_v33  ;;  %v1319_v50 = vor.u32 %v1767_v43, %v1318_v42  ;;  %v1781_v51 = vld [vmem:[%s2679_s1 + $0x134] sm:$0xf0]  ;;  %v1438_v52 = vld [vmem:[%s2679_s1 + $0x1b0] sm:$0xf]  ;;  %v1238_v59 = vld [vmem:[%s2679_s1 + $0x20] sm:$0xf] }
  0x1a   :  { %733 = vmatpush.bf16.msra.mxu3 %v1455_v34  ;;  %v1797_v53 = vld [vmem:[%s2679_s1 + $0x1b4] sm:$0xf0]  ;;  %v1310_v54 = vld [vmem:[%s2679_s1 + $0xb0] sm:$0xf]  ;;  %v1375_v57 = vor.u32 %v1781_v51, %v1374_v49  ;;  %v1747_v60 = vld [vmem:[%s2679_s1 + $0x24] sm:$0xf0] }
  0x1b   :  { %707 = vmatpush.bf16.msra.mxu1 %v1327_v38  ;;  %v1765_v55 = vld [vmem:[%s2679_s1 + $0xb4] sm:$0xf0]  ;;  %v1439_v58 = vor.u32 %v1797_v53, %v1438_v52  ;;  %v1366_v61 = vld [vmem:[%s2679_s1 + $0x120] sm:$0xf]  ;;  %v1779_v63 = vld [vmem:[%s2679_s1 + $0x124] sm:$0xf0]  ;;  %v1239_v4 = vor.u32 %v1747_v60, %v1238_v59 }
  0x1c   :  { %695 = vmatpush.bf16.msra.mxu0 %v1255_v44  ;;  %v1311_v62 = vor.u32 %v1765_v55, %v1310_v54  ;;  %v1430_v0 = vld [vmem:[%s2679_s1 + $0x1a0] sm:$0xf]  ;;  %v1795_v1 = vld [vmem:[%s2679_s1 + $0x1a4] sm:$0xf0]  ;;  %v1367_v5 = vor.u32 %v1779_v63, %v1366_v61  ;;  %v1230_v7 = vld [vmem:[%s2679_s1 + $0x10] sm:$0xf] }
  0x1d   :  { %721 = vmatpush.bf16.msra.mxu2 %v1383_v45  ;;  %v1302_v2 = vld [vmem:[%s2679_s1 + $0xa0] sm:$0xf]  ;;  %v1763_v3 = vld [vmem:[%s2679_s1 + $0xa4] sm:$0xf0]  ;;  %v1431_v6 = vor.u32 %v1795_v1, %v1430_v0  ;;  %v1745_v8 = vld [vmem:[%s2679_s1 + $0x14] sm:$0xf0] }
  0x1e   :  { %734 = vmatpush.bf16.msra.mxu3 %v1447_v46  ;;  %v1358_v9 = vld [vmem:[%s2679_s1 + $0x110] sm:$0xf]  ;;  %v1303_v10 = vor.u32 %v1763_v3, %v1302_v2  ;;  %v1777_v11 = vld [vmem:[%s2679_s1 + $0x114] sm:$0xf0]  ;;  %v1231_v16 = vor.u32 %v1745_v8, %v1230_v7  ;;  %v1222_v17 = vld [vmem:[%s2679_s1] sm:$0xf] }
  0x1f   :  { %708 = vmatpush.bf16.msra.mxu1 %v1319_v50  ;;  %v1422_v12 = vld [vmem:[%s2679_s1 + $0x190] sm:$0xf]  ;;  %v1793_v13 = vld [vmem:[%s2679_s1 + $0x194] sm:$0xf0]  ;;  %v1743_v18 = vld [vmem:[%s2679_s1 + $0x4] sm:$0xf0]  ;;  %v1359_v20 = vor.u32 %v1777_v11, %v1358_v9 }
  0x20   :  { %696 = vmatpush.bf16.msra.mxu0 %v1247_v56  ;;  %v1294_v14 = vld [vmem:[%s2679_s1 + $0x90] sm:$0xf]  ;;  %v1761_v15 = vld [vmem:[%s2679_s1 + $0x94] sm:$0xf0]  ;;  %v1350_v19 = vld [vmem:[%s2679_s1 + $0x100] sm:$0xf]  ;;  %v1423_v21 = vor.u32 %v1793_v13, %v1422_v12  ;;  %v1223_v32 = vor.u32 %v1743_v18, %v1222_v17 }
  0x21   :  { %722 = vmatpush.bf16.msra.mxu2 %v1375_v57  ;;  %v1775_v22 = vld [vmem:[%s2679_s1 + $0x104] sm:$0xf0]  ;;  %v1414_v23 = vld [vmem:[%s2679_s1 + $0x180] sm:$0xf]  ;;  %v1295_v25 = vor.u32 %v1761_v15, %v1294_v14  ;;  %v1534_v26 = vld [vmem:[%s2679_s1 + $0x270] sm:$0xf] }
  0x22   :  { %735 = vmatpush.bf16.msra.mxu3 %v1439_v58  ;;  %v1791_v24 = vld [vmem:[%s2679_s1 + $0x184] sm:$0xf0]  ;;  %v1821_v27 = vld [vmem:[%s2679_s1 + $0x274] sm:$0xf0]  ;;  %v1756_v28 = vld [vmem:[%s2679_s1 + $0x74] sm:$0xf]  ;;  %v1351_v36 = vor.u32 %v1775_v22, %v1350_v19 }
  0x23   :  { %709 = vmatpush.bf16.msra.mxu1 %v1311_v62  ;;  %v1280_v29 = vld [vmem:[%s2679_s1 + $0x78] sm:$0xf0]  ;;  %v1286_v30 = vld [vmem:[%s2679_s1 + $0x80] sm:$0xf]  ;;  %v1759_v31 = vld [vmem:[%s2679_s1 + $0x84] sm:$0xf0]  ;;  %v1415_v37 = vor.u32 %v1791_v24, %v1414_v23  ;;  %v1535_v41 = vor.u32 %v1821_v27, %v1534_v26 }
  0x24   :  { %697 = vmatpush.bf16.msra.mxu0 %v1239_v4  ;;  %v82_v33 = vld [vmem:[%s2678_s0 + $0x10] sm:$0xff]  ;;  %v1606_v34 = vld [vmem:[%s2679_s1 + $0x300] sm:$0xf]  ;;  %v1839_v35 = vld [vmem:[%s2679_s1 + $0x304] sm:$0xf0]  ;;  %v1283_v42 = vor.u32 %v1756_v28, %v1280_v29  ;;  %v1287_v46 = vor.u32 %v1759_v31, %v1286_v30  ;;  %vm688_vm0 = vcmask 130048  }
  0x25   :  { %723 = vmatpush.bf16.msra.mxu2 %v1367_v5  ;;  %v1598_v38 = vld [vmem:[%s2679_s1 + $0x2f0] sm:$0xf]  ;;  %v1837_v39 = vld [vmem:[%s2679_s1 + $0x2f4] sm:$0xf0]  ;;  %v1772_v40 = vld [vmem:[%s2679_s1 + $0xf4] sm:$0xf]  ;;  %v1607_v47 = vor.u32 %v1839_v35, %v1606_v34  ;;  %v2264_v51 = vpack.c.bf16 %v82_v33, %v82_v33 }
  0x26   :  { %736 = vmatpush.bf16.msra.mxu3 %v1431_v6  ;;  %v1344_v43 = vld [vmem:[%s2679_s1 + $0xf8] sm:$0xf0]  ;;  %v1526_v44 = vld [vmem:[%s2679_s1 + $0x260] sm:$0xf]  ;;  %v1819_v48 = vld [vmem:[%s2679_s1 + $0x264] sm:$0xf0]  ;;  %v1599_v52 = vor.u32 %v1837_v39, %v1598_v38 }
  0x27   :  { %710 = vmatpush.bf16.msra.mxu1 %v1303_v10  ;;  %v80_v45 = vld [vmem:[%s2678_s0] sm:$0xff]  ;;  %v1272_v50 = vld [vmem:[%s2679_s1 + $0x68] sm:$0xf0]  ;;  %v83_v53 = vld [vmem:[%s2678_s0 + $0x18] sm:$0xff]  ;;  %v1347_v55 = vor.u32 %v1772_v40, %v1344_v43  ;;  %v1527_v59 = vor.u32 %v1819_v48, %v1526_v44 }
  0x28   :  { %698 = vmatpush.bf16.msra.mxu0 %v1231_v16  ;;  %v1754_v49 = vld [vmem:[%s2679_s1 + $0x64] sm:$0xf]  ;;  %v81_v54 = vld [vmem:[%s2678_s0 + $0x8] sm:$0xff]  ;;  %v1590_v56 = vld [vmem:[%s2679_s1 + $0x2e0] sm:$0xf]  ;;  %v2278_v58 = vpack.c.bf16 %v80_v45, %v80_v45  ;;  %v2298_v3 = vpack.c.bf16 %v83_v53, %v83_v53 }
  0x29   :  { %724 = vmatpush.bf16.msra.mxu2 %v1359_v20  ;;  %v1835_v57 = vld [vmem:[%s2679_s1 + $0x2e4] sm:$0xf0]  ;;  %v1275_v60 = vor.u32 %v1754_v49, %v1272_v50  ;;  %v1770_v61 = vld [vmem:[%s2679_s1 + $0xe4] sm:$0xf]  ;;  %v1336_v62 = vld [vmem:[%s2679_s1 + $0xe8] sm:$0xf0]  ;;  %v2300_v4 = vpack.c.bf16 %v81_v54, %v81_v54 }
  0x2a   :  { %737 = vmatpush.bf16.msra.mxu3 %v1423_v21  ;;  %v1518_v63 = vld [vmem:[%s2679_s1 + $0x250] sm:$0xf]  ;;  %v1817_v0 = vld [vmem:[%s2679_s1 + $0x254] sm:$0xf0]  ;;  %v1752_v1 = vld [vmem:[%s2679_s1 + $0x54] sm:$0xf]  ;;  %v1591_v5 = vor.u32 %v1835_v57, %v1590_v56  ;;  %v1339_v6 = vor.u32 %v1770_v61, %v1336_v62 }
  0x2b   :  { %711 = vmatpush.bf16.msra.mxu1 %v1295_v25  ;;  %v1264_v2 = vld [vmem:[%s2679_s1 + $0x58] sm:$0xf0]  ;;  %v1582_v7 = vld [vmem:[%s2679_s1 + $0x2d0] sm:$0xf]  ;;  %v1833_v8 = vld [vmem:[%s2679_s1 + $0x2d4] sm:$0xf0]  ;;  %v1519_v9 = vor.u32 %v1817_v0, %v1518_v63 }
  0x2c   :  { %699 = vmatpush.bf16.msra.mxu0 %v1223_v32  ;;  %v1267_v10 = vor.u32 %v1752_v1, %v1264_v2  ;;  %v1768_v11 = vld [vmem:[%s2679_s1 + $0xd4] sm:$0xf]  ;;  %v1328_v12 = vld [vmem:[%s2679_s1 + $0xd8] sm:$0xf0]  ;;  %v1510_v13 = vld [vmem:[%s2679_s1 + $0x240] sm:$0xf]  ;;  %v1583_v17 = vor.u32 %v1833_v8, %v1582_v7 }
  0x2d   :  { %725 = vmatpush.bf16.msra.mxu2 %v1351_v36  ;;  %v1815_v14 = vld [vmem:[%s2679_s1 + $0x244] sm:$0xf0]  ;;  %v1750_v15 = vld [vmem:[%s2679_s1 + $0x44] sm:$0xf]  ;;  %v1256_v16 = vld [vmem:[%s2679_s1 + $0x48] sm:$0xf0]  ;;  %v1331_v18 = vor.u32 %v1768_v11, %v1328_v12 }
  0x2e   :  { %738 = vmatpush.bf16.msra.mxu3 %v1415_v37  ;;  %v1574_v19 = vld [vmem:[%s2679_s1 + $0x2c0] sm:$0xf]  ;;  %v1831_v20 = vld [vmem:[%s2679_s1 + $0x2c4] sm:$0xf0]  ;;  %v1511_v21 = vor.u32 %v1815_v14, %v1510_v13  ;;  %v1259_v22 = vor.u32 %v1750_v15, %v1256_v16  ;;  %v1766_v23 = vld [vmem:[%s2679_s1 + $0xc4] sm:$0xf] }
  0x2f   :  { %712 = vmatpush.bf16.msra.mxu1 %v1287_v46  ;;  %700 = vmatmul.bf16.vlgmr.msra.gmra.mxu0 %v2278_v58  ;;  %v1320_v24 = vld [vmem:[%s2679_s1 + $0xc8] sm:$0xf0]  ;;  %v1502_v25 = vld [vmem:[%s2679_s1 + $0x230] sm:$0xf]  ;;  %v1813_v26 = vld [vmem:[%s2679_s1 + $0x234] sm:$0xf0]  ;;  %v1575_v29 = vor.u32 %v1831_v20, %v1574_v19 }
  0x30   :  { %744 = vmatpush.bf16.msrb.mxu0 %v1535_v41  ;;  %726 = vmatmul.bf16.vlgmr.msra.gmra.mxu2 %v2264_v51  ;;  %v1748_v27 = vld [vmem:[%s2679_s1 + $0x34] sm:$0xf]  ;;  %v1248_v28 = vld [vmem:[%s2679_s1 + $0x38] sm:$0xf0]  ;;  %v1323_v30 = vor.u32 %v1766_v23, %v1320_v24  ;;  %v1566_v31 = vld [vmem:[%s2679_s1 + $0x2b0] sm:$0xf]  ;;  %v1503_v34 = vor.u32 %v1813_v26, %v1502_v25 }
  0x31   :  { %777 = vmatpush.bf16.msrb.mxu2 %v1607_v47  ;;  %739 = vmatmul.bf16.vlgmr.msra.gmra.mxu3 %v2298_v3  ;;  %v1829_v32 = vld [vmem:[%s2679_s1 + $0x2b4] sm:$0xf0]  ;;  %v86_v33 = vld [vmem:[%s2678_s0 + $0x30] sm:$0xff]  ;;  %v1251_v35 = vor.u32 %v1748_v27, %v1248_v28  ;;  %v1312_v37 = vld [vmem:[%s2679_s1 + $0xb8] sm:$0xf0] }
  0x32   :  { %783 = vmatpush.bf16.msrb.mxu3 %v1283_v42  ;;  %713 = vmatmul.bf16.vlgmr.msra.gmra.mxu1 %v2300_v4  ;;  %v1764_v36 = vld [vmem:[%s2679_s1 + $0xb4] sm:$0xf]  ;;  %v1494_v38 = vld [vmem:[%s2679_s1 + $0x220] sm:$0xf]  ;;  %v1811_v39 = vld [vmem:[%s2679_s1 + $0x224] sm:$0xf0]  ;;  %v1567_v42 = vor.u32 %v1829_v32, %v1566_v31  ;;  %v2381_v43 = vpack.c.bf16 %v86_v33, %v86_v33 }
  0x33   :  { %757 = vmatpush.bf16.msrb.mxu1 %v1599_v52  ;;  %v1746_v40 = vld [vmem:[%s2679_s1 + $0x24] sm:$0xf]  ;;  %v1240_v41 = vld [vmem:[%s2679_s1 + $0x28] sm:$0xf0]  ;;  %v1315_v44 = vor.u32 %v1764_v36, %v1312_v37  ;;  %v1558_v45 = vld [vmem:[%s2679_s1 + $0x2a0] sm:$0xf]  ;;  %v1495_v47 = vor.u32 %v1811_v39, %v1494_v38 }
  0x34   :  { %745 = vmatpush.bf16.msrb.mxu0 %v1527_v59  ;;  %v1827_v46 = vld [vmem:[%s2679_s1 + $0x2a4] sm:$0xf0]  ;;  %v1243_v48 = vor.u32 %v1746_v40, %v1240_v41  ;;  %v1762_v49 = vld [vmem:[%s2679_s1 + $0xa4] sm:$0xf]  ;;  %v1304_v50 = vld [vmem:[%s2679_s1 + $0xa8] sm:$0xf0] }
  0x35   :  { %796 = vmatpush.bf16.msra.mxu2 %v1347_v55  ;;  %v1486_v52 = vld [vmem:[%s2679_s1 + $0x210] sm:$0xf]  ;;  %v1809_v53 = vld [vmem:[%s2679_s1 + $0x214] sm:$0xf0]  ;;  %v1744_v54 = vld [vmem:[%s2679_s1 + $0x14] sm:$0xf]  ;;  %v1559_v56 = vor.u32 %v1827_v46, %v1558_v45  ;;  %v1307_v57 = vor.u32 %v1762_v49, %v1304_v50 }
  0x36   :  { %784 = vmatpush.bf16.msrb.mxu3 %v1275_v60  ;;  %v1232_v55 = vld [vmem:[%s2679_s1 + $0x18] sm:$0xf0]  ;;  %v1550_v59 = vld [vmem:[%s2679_s1 + $0x290] sm:$0xf]  ;;  %v1825_v60 = vld [vmem:[%s2679_s1 + $0x294] sm:$0xf0]  ;;  %v1487_v62 = vor.u32 %v1809_v53, %v1486_v52 }
  0x37   :  { %758 = vmatpush.bf16.msrb.mxu1 %v1591_v5  ;;  %v1760_v61 = vld [vmem:[%s2679_s1 + $0x94] sm:$0xf]  ;;  %v1235_v63 = vor.u32 %v1744_v54, %v1232_v55  ;;  %v1296_v0 = vld [vmem:[%s2679_s1 + $0x98] sm:$0xf0]  ;;  %v1478_v1 = vld [vmem:[%s2679_s1 + $0x200] sm:$0xf]  ;;  %v1551_v8 = vor.u32 %v1825_v60, %v1550_v59 }
  0x38   :  { %746 = vmatpush.bf16.msrb.mxu0 %v1519_v9  ;;  %v1807_v2 = vld [vmem:[%s2679_s1 + $0x204] sm:$0xf0]  ;;  %v1742_v5 = vld [vmem:[%s2679_s1 + $0x4] sm:$0xf]  ;;  %v1788_v7 = vld [vmem:[%s2679_s1 + $0x174] sm:$0xf]  ;;  %v1299_v12 = vor.u32 %v1760_v61, %v1296_v0 }
  0x39   :  { %797 = vmatpush.bf16.msra.mxu2 %v1339_v6  ;;  %v1224_v6 = vld [vmem:[%s2679_s1 + $0x8] sm:$0xf0]  ;;  %v1408_v9 = vld [vmem:[%s2679_s1 + $0x178] sm:$0xf0]  ;;  %v1542_v13 = vld [vmem:[%s2679_s1 + $0x280] sm:$0xf]  ;;  %v1479_v16 = vor.u32 %v1807_v2, %v1478_v1 }
  0x3a   :  { %785 = vmatpush.bf16.msrb.mxu3 %v1267_v10  ;;  %v1820_v10 = vld [vmem:[%s2679_s1 + $0x274] sm:$0xf]  ;;  %v1536_v11 = vld [vmem:[%s2679_s1 + $0x278] sm:$0xf0]  ;;  %v1823_v14 = vld [vmem:[%s2679_s1 + $0x284] sm:$0xf0] }
  0x3b   :  { %759 = vmatpush.bf16.msrb.mxu1 %v1583_v17  ;;  %v84_v15 = vld [vmem:[%s2678_s0 + $0x20] sm:$0xff]  ;;  %v1227_v17 = vor.u32 %v1742_v5, %v1224_v6  ;;  %v1288_v19 = vld [vmem:[%s2679_s1 + $0x88] sm:$0xf0]  ;;  %v1804_v20 = vld [vmem:[%s2679_s1 + $0x1f4] sm:$0xf]  ;;  %v1543_v26 = vor.u32 %v1823_v14, %v1542_v13 }
  0x3c   :  { %747 = vmatpush.bf16.msrb.mxu0 %v1511_v21  ;;  %v1411_v21 = vor.u32 %v1788_v7, %v1408_v9  ;;  %v1472_v23 = vld [vmem:[%s2679_s1 + $0x1f8] sm:$0xf0]  ;;  %v1836_v24 = vld [vmem:[%s2679_s1 + $0x2f4] sm:$0xf]  ;;  %v85_v27 = vld [vmem:[%s2678_s0 + $0x28] sm:$0xff] }
  0x3d   :  { %798 = vmatpush.bf16.msra.mxu2 %v1331_v18  ;;  %v1758_v18 = vld [vmem:[%s2679_s1 + $0x84] sm:$0xf]  ;;  %v1600_v25 = vld [vmem:[%s2679_s1 + $0x2f8] sm:$0xf0]  ;;  %v1528_v33 = vld [vmem:[%s2679_s1 + $0x268] sm:$0xf0]  ;;  %v2492_v37 = vpack.c.bf16 %v85_v27, %v85_v27 }
  0x3e   :  { %786 = vmatpush.bf16.msrb.mxu3 %v1259_v22  ;;  %v1539_v22 = vor.u32 %v1820_v10, %v1536_v11  ;;  %v1786_v28 = vld [vmem:[%s2679_s1 + $0x164] sm:$0xf]  ;;  %v1291_v31 = vor.u32 %v1758_v18, %v1288_v19  ;;  %v1464_v39 = vld [vmem:[%s2679_s1 + $0x1e8] sm:$0xf0]  ;;  %v1392_v45 = vld [vmem:[%s2679_s1 + $0x158] sm:$0xf0] }
  0x3f   :  { %760 = vmatpush.bf16.msrb.mxu1 %v1575_v29  ;;  %v1400_v29 = vld [vmem:[%s2679_s1 + $0x168] sm:$0xf0]  ;;  %v1818_v32 = vld [vmem:[%s2679_s1 + $0x264] sm:$0xf]  ;;  %v1816_v46 = vld [vmem:[%s2679_s1 + $0x254] sm:$0xf] }
  0x40   :  { %748 = vmatpush.bf16.msrb.mxu0 %v1503_v34  ;;  %1612 = vmatmul.msk.bf16.vlgmr.msrb.gmra.mxu2 %vm688_vm0, %v2381_v43  ;;  %v1475_v34 = vor.u32 %v1804_v20, %v1472_v23  ;;  %v1802_v36 = vld [vmem:[%s2679_s1 + $0x1e4] sm:$0xf]  ;;  %v1403_v38 = vor.u32 %v1786_v28, %v1400_v29  ;;  %v1592_v41 = vld [vmem:[%s2679_s1 + $0x2e8] sm:$0xf0]  ;;  %v1800_v50 = vld [vmem:[%s2679_s1 + $0x1d4] sm:$0xf] }
  0x41   :  { %799 = vmatpush.bf16.msra.mxu2 %v1323_v30  ;;  %v2481_v30 = vpack.c.bf16 %v84_v15, %v84_v15  ;;  %v1834_v40 = vld [vmem:[%s2679_s1 + $0x2e4] sm:$0xf]  ;;  %v1456_v52 = vld [vmem:[%s2679_s1 + $0x1d8] sm:$0xf0]  ;;  %v1832_v54 = vld [vmem:[%s2679_s1 + $0x2d4] sm:$0xf] }
  0x42   :  { %787 = vmatpush.bf16.msrb.mxu3 %v1251_v35  ;;  %v1603_v35 = vor.u32 %v1836_v24, %v1600_v25  ;;  %v1595_v49 = vor.u32 %v1834_v40, %v1592_v41  ;;  %v1584_v55 = vld [vmem:[%s2679_s1 + $0x2d8] sm:$0xf0]  ;;  %v1384_v59 = vld [vmem:[%s2679_s1 + $0x148] sm:$0xf0]  ;;  %v1814_v60 = vld [vmem:[%s2679_s1 + $0x244] sm:$0xf] }
  0x43   :  { %761 = vmatpush.bf16.msrb.mxu1 %v1567_v42  ;;  %v1531_v42 = vor.u32 %v1818_v32, %v1528_v33  ;;  %v1512_v61 = vld [vmem:[%s2679_s1 + $0x248] sm:$0xf0]  ;;  %v1798_v0 = vld [vmem:[%s2679_s1 + $0x1c4] sm:$0xf]  ;;  %v1780_v6 = vld [vmem:[%s2679_s1 + $0x134] sm:$0xf] }
  0x44   :  { %749 = vmatpush.bf16.msrb.mxu0 %v1495_v47  ;;  %v1520_v47 = vld [vmem:[%s2679_s1 + $0x258] sm:$0xf0]  ;;  %v1830_v2 = vld [vmem:[%s2679_s1 + $0x2c4] sm:$0xf]  ;;  %v1515_v5 = vor.u32 %v1814_v60, %v1512_v61  ;;  %v1828_v15 = vld [vmem:[%s2679_s1 + $0x2b4] sm:$0xf] }
  0x45   :  { %800 = vmatpush.bf16.msra.mxu2 %v1315_v44  ;;  %v1784_v44 = vld [vmem:[%s2679_s1 + $0x154] sm:$0xf]  ;;  %v1376_v7 = vld [vmem:[%s2679_s1 + $0x138] sm:$0xf0]  ;;  %v1778_v18 = vld [vmem:[%s2679_s1 + $0x124] sm:$0xf] }
  0x46   :  { %788 = vmatpush.bf16.msrb.mxu3 %v1243_v48  ;;  %v1467_v48 = vor.u32 %v1802_v36, %v1464_v39  ;;  %v1395_v53 = vor.u32 %v1784_v44, %v1392_v45  ;;  %v1504_v9 = vld [vmem:[%s2679_s1 + $0x238] sm:$0xf0]  ;;  %v1379_v13 = vor.u32 %v1780_v6, %v1376_v7  ;;  %v1368_v19 = vld [vmem:[%s2679_s1 + $0x128] sm:$0xf0]  ;;  %v1810_v20 = vld [vmem:[%s2679_s1 + $0x224] sm:$0xf] }
  0x47   :  { %762 = vmatpush.bf16.msrb.mxu1 %v1559_v56  ;;  %v1782_v56 = vld [vmem:[%s2679_s1 + $0x144] sm:$0xf]  ;;  %v1440_v14 = vld [vmem:[%s2679_s1 + $0x1b8] sm:$0xf0]  ;;  %v1371_v25 = vor.u32 %v1778_v18, %v1368_v19  ;;  %v1560_v28 = vld [vmem:[%s2679_s1 + $0x2a8] sm:$0xf0] }
  0x48   :  { %750 = vmatpush.bf16.msrb.mxu0 %v1487_v62  ;;  %v1459_v62 = vor.u32 %v1800_v50, %v1456_v52  ;;  %v1387_v1 = vor.u32 %v1782_v56, %v1384_v59  ;;  %v1794_v24 = vld [vmem:[%s2679_s1 + $0x1a4] sm:$0xf]  ;;  %v1360_v32 = vld [vmem:[%s2679_s1 + $0x118] sm:$0xf0]  ;;  %v1808_v33 = vld [vmem:[%s2679_s1 + $0x214] sm:$0xf] }
  0x49   :  { %801 = vmatpush.bf16.msra.mxu2 %v1307_v57  ;;  %v1523_v57 = vor.u32 %v1816_v46, %v1520_v47  ;;  %v1826_v27 = vld [vmem:[%s2679_s1 + $0x2a4] sm:$0xf]  ;;  %v1424_v40 = vld [vmem:[%s2679_s1 + $0x198] sm:$0xf0]  ;;  %v1824_v41 = vld [vmem:[%s2679_s1 + $0x294] sm:$0xf] }
  0x4a   :  { %789 = vmatpush.bf16.msrb.mxu3 %v1235_v63  ;;  %v1587_v63 = vor.u32 %v1832_v54, %v1584_v55  ;;  %v1563_v36 = vor.u32 %v1826_v27, %v1560_v28  ;;  %v1774_v45 = vld [vmem:[%s2679_s1 + $0x104] sm:$0xf]  ;;  %v1352_v46 = vld [vmem:[%s2679_s1 + $0x108] sm:$0xf0]  ;;  %v1853_v19 = vld [vmem:[#allocation2 + $0x68] sm:$0xff] }
  0x4b   :  { %763 = vmatpush.bf16.msrb.mxu1 %v1551_v8  ;;  %v1812_v8 = vld [vmem:[%s2679_s1 + $0x234] sm:$0xf]  ;;  %v1806_v47 = vld [vmem:[%s2679_s1 + $0x204] sm:$0xf]  ;;  %v1608_v50 = vld [vmem:[%s2679_s1 + $0x308] sm:$0xf0]  ;;  %v1355_v54 = vor.u32 %v1774_v45, %v1352_v46 }
  0x4c   :  { %751 = vmatpush.bf16.msrb.mxu0 %v1479_v16  ;;  %v1568_v16 = vld [vmem:[%s2679_s1 + $0x2b8] sm:$0xf0]  ;;  %v1790_v55 = vld [vmem:[%s2679_s1 + $0x184] sm:$0xf]  ;;  %v1416_v56 = vld [vmem:[%s2679_s1 + $0x188] sm:$0xf0] }
  0x4d   :  { %802 = vmatpush.bf16.msra.mxu2 %v1299_v12  ;;  %v1796_v12 = vld [vmem:[%s2679_s1 + $0x1b4] sm:$0xf]  ;;  %v1571_v23 = vor.u32 %v1828_v15, %v1568_v16  ;;  %v1822_v59 = vld [vmem:[%s2679_s1 + $0x284] sm:$0xf]  ;;  %v1544_v60 = vld [vmem:[%s2679_s1 + $0x288] sm:$0xf0] }
  0x4e   :  { %790 = vmatpush.bf16.msrb.mxu3 %v1227_v17  ;;  %v1507_v17 = vor.u32 %v1812_v8, %v1504_v9  ;;  %v1855_v9 = vld [vmem:[#allocation2 + $0x78] sm:$0xff] }
  0x4f   :  { %764 = vmatpush.bf16.msrb.mxu1 %v1543_v26  ;;  %752 = vmatmul.bf16.vlgmr.msrb.gmra.mxu0 %v2481_v30  ;;  %v1432_v26 = vld [vmem:[%s2679_s1 + $0x1a8] sm:$0xf0] }
  0x50   :  { %809 = vmatpush.bf16.msra.mxu0 %v1411_v21  ;;  %v1496_v21 = vld [vmem:[%s2679_s1 + $0x228] sm:$0xf0] }
  0x51   :  { %803 = vmatpush.bf16.msra.mxu2 %v1291_v31  ;;  %791 = vmatmul.bf16.vlgmr.msrb.gmra.mxu3 %v2278_v58  ;;  %v1576_v58 = vld [vmem:[%s2679_s1 + $0x2c8] sm:$0xf0]  ;;  %v1499_v29 = vor.u32 %v1810_v20, %v1496_v21  ;;  %v1776_v31 = vld [vmem:[%s2679_s1 + $0x114] sm:$0xf] }
  0x52   :  { %835 = vmatpush.bf16.msra.mxu3 %v1539_v22  ;;  %765 = vmatmul.bf16.vlgmr.msrb.gmra.mxu1 %v2492_v37  ;;  %v1579_v11 = vor.u32 %v1830_v2, %v1576_v58  ;;  %v1443_v22 = vor.u32 %v1796_v12, %v1440_v14  ;;  %v1363_v39 = vor.u32 %v1776_v31, %v1360_v32  ;;  %v1844_v2 = vld [vmem:[#allocation2 + $0x20] sm:$0xff]  ;;  %v1843_v58 = vld [vmem:[#allocation2 + $0x18] sm:$0xff]  ;;  %v1850_v32 = vld [vmem:[#allocation2 + $0x50] sm:$0xff] }
  0x53   :  { %822 = vmatpush.bf16.msra.mxu1 %v1475_v34  ;;  %v1488_v34 = vld [vmem:[%s2679_s1 + $0x218] sm:$0xf0]  ;;  %v1851_v27 = vld [vmem:[#allocation2 + $0x58] sm:$0xff] }
  0x54   :  { %810 = vmatpush.bf16.msra.mxu0 %v1403_v38  ;;  %804 = vmatmul.bf16.vlgmr.msra.gmra.mxu2 %v2300_v4  ;;  %v1448_v4 = vld [vmem:[%s2679_s1 + $0x1c8] sm:$0xf0]  ;;  %v1792_v38 = vld [vmem:[%s2679_s1 + $0x194] sm:$0xf]  ;;  %v1491_v44 = vor.u32 %v1808_v33, %v1488_v34 }
  0x55   :  { %848 = vmatpush.bf16.msrb.mxu2 %v1603_v35  ;;  %v1451_v10 = vor.u32 %v1798_v0, %v1448_v4  ;;  %v1435_v35 = vor.u32 %v1794_v24, %v1432_v26  ;;  %v1427_v52 = vor.u32 %v1792_v38, %v1424_v40  ;;  %v1847_v0 = vld [vmem:[#allocation2 + $0x38] sm:$0xff]  ;;  %v1845_v4 = vld [vmem:[#allocation2 + $0x28] sm:$0xff] }
  0x56   :  { %836 = vmatpush.bf16.msra.mxu3 %v1531_v42  ;;  %v1552_v42 = vld [vmem:[%s2679_s1 + $0x298] sm:$0xf0] }
  0x57   :  { %823 = vmatpush.bf16.msra.mxu1 %v1467_v48  ;;  %v1480_v48 = vld [vmem:[%s2679_s1 + $0x208] sm:$0xf0]  ;;  %v1849_v38 = vld [vmem:[#allocation2 + $0x48] sm:$0xff] }
  0x58   :  { %811 = vmatpush.bf16.msra.mxu0 %v1395_v53  ;;  %v1555_v53 = vor.u32 %v1824_v41, %v1552_v42 }
  0x59   :  { %849 = vmatpush.bf16.msrb.mxu2 %v1595_v49  ;;  %v1838_v49 = vld [vmem:[%s2679_s1 + $0x304] sm:$0xf] }
  0x5a   :  { %837 = vmatpush.bf16.msra.mxu3 %v1523_v57  ;;  %v1483_v57 = vor.u32 %v1806_v47, %v1480_v48  ;;  %v1611_v61 = vor.u32 %v1838_v49, %v1608_v50 }
  0x5b   :  { %824 = vmatpush.bf16.msra.mxu1 %v1459_v62  ;;  %v1419_v62 = vor.u32 %v1790_v55, %v1416_v56 }
  0x5c   :  { %812 = vmatpush.bf16.msra.mxu0 %v1387_v1  ;;  %v1846_v1 = vld [vmem:[#allocation2 + $0x30] sm:$0xff] }
  0x5d   :  { %850 = vmatpush.bf16.msrb.mxu2 %v1587_v63  ;;  %v1547_v63 = vor.u32 %v1822_v59, %v1544_v60 }
  0x5e   :  { %838 = vmatpush.bf16.msra.mxu3 %v1515_v5 }
  0x5f   :  { %825 = vmatpush.bf16.msra.mxu1 %v1451_v10 }
  0x60   :  { %813 = vmatpush.bf16.msra.mxu0 %v1379_v13  ;;  %v1854_v13 = vld [vmem:[#allocation2 + $0x70] sm:$0xff] }
  0x61   :  { %851 = vmatpush.bf16.msrb.mxu2 %v1579_v11 }
  0x62   :  { %839 = vmatpush.bf16.msra.mxu3 %v1507_v17 }
  0x63   :  { %826 = vmatpush.bf16.msra.mxu1 %v1443_v22  ;;  %v1852_v22 = vld [vmem:[#allocation2 + $0x60] sm:$0xff] }
  0x64   :  { %814 = vmatpush.bf16.msra.mxu0 %v1371_v25 }
  0x65   :  { %852 = vmatpush.bf16.msrb.mxu2 %v1571_v23 }
  0x66   :  { %840 = vmatpush.bf16.msra.mxu3 %v1499_v29 }
  0x67   :  { %827 = vmatpush.bf16.msra.mxu1 %v1435_v35 }
  0x68   :  { %815 = vmatpush.bf16.msra.mxu0 %v1363_v39  ;;  %v1848_v39 = vld [vmem:[#allocation2 + $0x40] sm:$0xff] }
  0x69   :  { %853 = vmatpush.bf16.msrb.mxu2 %v1563_v36 }
  0x6a   :  { %841 = vmatpush.bf16.msra.mxu3 %v1491_v44 }
  0x6b   :  { %828 = vmatpush.bf16.msra.mxu1 %v1427_v52 }
  0x6c   :  { %816 = vmatpush.bf16.msra.mxu0 %v1355_v54 }
  0x6d   :  { %854 = vmatpush.bf16.msrb.mxu2 %v1555_v53 }
  0x6e   :  { %842 = vmatpush.bf16.msra.mxu3 %v1483_v57 }
  0x6f   :  { %829 = vmatpush.bf16.msra.mxu1 %v1419_v62  ;;  %817 = vmatmul.bf16.vlgmr.msra.gmra.mxu0 %v2264_v51  ;;  %v1842_v51 = vld [vmem:[#allocation2 + $0x10] sm:$0xff] }
  0x70   :  { %868 = vmatpush.bf16.msrb.mxu0 %v1611_v61 }
  0x71   :  { %843 = vmatmul.bf16.vlgmr.msra.gmra.mxu3 %v2481_v30  ;;  %855 = vmatpush.bf16.msrb.mxu2 %v1547_v63  ;;  %v1841_v30 = vld [vmem:[#allocation2 + $0x8] sm:$0xff] }
  0x72   :  { %830 = vmatmul.bf16.vlgmr.msra.gmra.mxu1 %v2298_v3  ;;  %1023 = vmatpush.bf16.msrb.mxu3 %v1855_v9  ;;  %v1868_v9 = vld [vmem:[#allocation6 + $0x20] sm:$0xff] }
  0x73   :  { %1010 = vmatpush.bf16.msrb.mxu1 %v1847_v0 }
  0x74   :  { %856 = vmatmul.bf16.vlgmr.msrb.gmra.mxu2 %v2492_v37  ;;  %v1840_v37 = vld [vmem:[#allocation2] sm:$0xff] }
  0x76   :  { %1024 = vmatpush.bf16.msrb.mxu3 %v1854_v13 }
  0x77   :  { %1011 = vmatpush.bf16.msrb.mxu1 %v1846_v1  ;;  %v1863_v1 = vld [vmem:[#allocation4 + $0x38] sm:$0xff] }
  0x78   :  { %1106 = vmatpush.bf16.msra.mxu0 %v1863_v1 }
  0x7a   :  { %1025 = vmatpush.bf16.msrb.mxu3 %v1853_v19  ;;  %v1865_v19 = vld [vmem:[#allocation6 + $0x8] sm:$0xff] }
  0x7b   :  { %1012 = vmatpush.bf16.msrb.mxu1 %v1845_v4  ;;  %v1862_v4 = vld [vmem:[#allocation4 + $0x30] sm:$0xff] }
  0x7c   :  { %1107 = vmatpush.bf16.msra.mxu0 %v1862_v4 }
  0x7e   :  { %1026 = vmatpush.bf16.msrb.mxu3 %v1852_v22 }
  0x7f   :  { %1613 = vmatmul.msk.bf16.vlgmr.msrb.gmra.mxu0 %vm688_vm0, %v2381_v43  ;;  %1013 = vmatpush.bf16.msrb.mxu1 %v1844_v2  ;;  %v192_v43 = vld [vmem:[%s2680_s2] sm:$0x3]  ;;  %v1861_v2 = vld [vmem:[#allocation4 + $0x28] sm:$0xff] }
  0x80   :  { %v194_v11 = vperm.slane %v192_v43, 0  ;;  %v195_v42 = vperm.slane %v192_v43, 1  ;;  %1108 = vmatpush.bf16.msra.mxu0 %v1861_v2  ;;  %v1871_v43 = vld [vmem:[#allocation6 + $0x38] sm:$0xff] }
  0x81   :  { %1189 = vmatpush.bf16.msra.mxu2 %v1871_v43 }
  0x82   :  { %1027 = vmatpush.bf16.msrb.mxu3 %v1851_v27  ;;  %v1879_v27 = vld [vmem:[%s2686_s8] ss:$0 sm:$0xff] }
  0x83   :  { %1014 = vmatpush.bf16.msrb.mxu1 %v1843_v58  ;;  %v1860_v58 = vld [vmem:[#allocation4 + $0x20] sm:$0xff] }
  0x84   :  { %1109 = vmatpush.bf16.msra.mxu0 %v1860_v58 }
  0x86   :  { %1028 = vmatpush.bf16.msrb.mxu3 %v1850_v32 }
  0x87   :  { %1015 = vmatpush.bf16.msrb.mxu1 %v1842_v51  ;;  %v1859_v51 = vld [vmem:[#allocation4 + $0x18] sm:$0xff] }
  0x88   :  { %1110 = vmatpush.bf16.msra.mxu0 %v1859_v51 }
  0x8a   :  { %1029 = vmatpush.bf16.msrb.mxu3 %v1849_v38 }
  0x8b   :  { %1016 = vmatpush.bf16.msrb.mxu1 %v1841_v30  ;;  %v1858_v30 = vld [vmem:[#allocation4 + $0x10] sm:$0xff] }
  0x8c   :  { %1111 = vmatpush.bf16.msra.mxu0 %v1858_v30 }
  0x8e   :  { %1030 = vmatpush.bf16.msrb.mxu3 %v1848_v39 }
  0x8f   :  { %1017 = vmatpush.bf16.msrb.mxu1 %v1840_v37  ;;  %v1857_v37 = vld [vmem:[#allocation4 + $0x8] sm:$0xff] }
  0x90   :  { %1112 = vmatpush.bf16.msra.mxu0 %v1857_v37 }
  0xac   :  { %v701_v5 = vpop.f32.mrf.mxu0 }
  0xad   :  { %v702_v14 = vadd.f32 %v701_v5, %v194_v11  ;;  %v1866_v11 = vld [vmem:[#allocation6 + $0x10] sm:$0xff] }
  0xaf   :  { %v714_v3 = vpop.f32.mrf.mxu1 }
  0xb0   :  { %v715_v16 = vadd.f32 %v714_v3, %v702_v14 }
  0xb3   :  { %v727_v6 = vpop.f32.mrf.mxu2 }
  0xb4   :  { %v740_v7 = vpop.f32.mrf.mxu3  ;;  %v703_v8 = vpop.f32.mrf.mxu0  ;;  %v728_v18 = vadd.f32 %v727_v6, %v715_v16  ;;  %v1856_v6 = vld [vmem:[#allocation4] sm:$0xff] }
  0xb5   :  { %1113 = vmatpush.bf16.msra.mxu0 %v1856_v6  ;;  %v1869_v8 = vld [vmem:[#allocation6 + $0x28] sm:$0xff] }
  0xb6   :  { %v741_v20 = vadd.f32 %v740_v7, %v728_v18  ;;  %v1870_v7 = vld [vmem:[#allocation6 + $0x30] sm:$0xff] }
  0xb7   :  { %v716_v10 = vpop.f32.mrf.mxu1  ;;  %1190 = vmatpush.bf16.msra.mxu2 %v1870_v7 }
  0xb8   :  { %v1867_v10 = vld [vmem:[#allocation6 + $0x18] sm:$0xff] }
  0xbb   :  { %v729_v12 = vpop.f32.mrf.mxu2  ;;  %1191 = vmatpush.bf16.msra.mxu2 %v1869_v8 }
  0xbc   :  { %v742_v15 = vpop.f32.mrf.mxu3  ;;  %v1877_v12 = vld [vmem:[%s2682_s4] ss:$0 sm:$0xff] }
  0xbf   :  { %1192 = vmatpush.bf16.msra.mxu2 %v1868_v9 }
  0xc3   :  { %v779_v17 = vpop.f32.mrf.mxu2  ;;  %1193 = vmatpush.bf16.msra.mxu2 %v1867_v10 }
  0xc7   :  { %1194 = vmatpush.bf16.msra.mxu2 %v1866_v11 }
  0xcb   :  { %v781_v24 = vpop.f32.mrf.mxu2  ;;  %1195 = vmatpush.bf16.msra.mxu2 %v1865_v19 }
  0xcc   :  { %v753_v21 = vpop.f32.mrf.mxu0 }
  0xcd   :  { %v754_v23 = vadd.f32 %v753_v21, %v741_v20  ;;  %v1864_v20 = vld [vmem:[#allocation6] sm:$0xff]  ;;  %v1878_v21 = vld [vmem:[%s2684_s6] ss:$0 sm:$0xff] }
  0xcf   :  { %v766_v25 = vpop.f32.mrf.mxu1  ;;  %1196 = vmatpush.bf16.msra.mxu2 %v1864_v20 }
  0xd0   :  { %v767_v26 = vadd.f32 %v766_v25, %v754_v23 }
  0xd2   :  { %v780_v28 = vadd.f32 %v779_v17, %v767_v26 }
  0xd4   :  { %v874_v29 = vmax.f32 %v780_v28, 0.0  ;;  %v755_v31 = vpop.f32.mrf.mxu0  ;;  %v792_v35 = vpop.f32.mrf.mxu3 }
  0xd5   :  { %v793_v44 = vadd.f32 %v792_v35, %v195_v42 }
  0xd6   :  { %v876_v33 = vpack.c.bf16 %v874_v29, %v874_v29 }
  0xd7   :  { %v805_v34 = vpop.f32.mrf.mxu2  ;;  %v768_v36 = vpop.f32.mrf.mxu1 }
  0xd8   :  { %1018 = vmatmul.bf16.vlgmr.msrb.gmra.mxu1 %v876_v33  ;;  %v806_v46 = vadd.f32 %v805_v34, %v793_v44 }
  0xdc   :  { %v794_v41 = vpop.f32.mrf.mxu3 }
  0xdf   :  { %v807_v40 = vpop.f32.mrf.mxu2 }
  0xec   :  { %v818_v45 = vpop.f32.mrf.mxu0 }
  0xed   :  { %v819_v48 = vadd.f32 %v818_v45, %v806_v46 }
  0xef   :  { %v831_v47 = vpop.f32.mrf.mxu1 }
  0xf0   :  { %v832_v52 = vadd.f32 %v831_v47, %v819_v48 }
  0xf4   :  { %v844_v49 = vpop.f32.mrf.mxu3  ;;  %v820_v50 = vpop.f32.mrf.mxu0 }
  0xf5   :  { %v845_v54 = vadd.f32 %v844_v49, %v832_v52 }
  0xf7   :  { %v857_v53 = vpop.f32.mrf.mxu2  ;;  %v833_v55 = vpop.f32.mrf.mxu1 }
  0xf8   :  { %v858_v56 = vadd.f32 %v857_v53, %v845_v54 }
  0xfc   :  { %v846_v57 = vpop.f32.mrf.mxu3  ;;  %v870_v59 = vpop.f32.mrf.mxu0 }
  0xfd   :  { %v871_v60 = vadd.f32 %v870_v59, %v858_v56 }
  0xff   :  { %v859_v61 = vpop.f32.mrf.mxu2  ;;  %v875_v62 = vmax.f32 %v871_v60, 0.0 }
 0x101   :  { %v877_v63 = vpack.c.bf16 %v875_v62, %v875_v62 }
 0x103   :  { %1031 = vmatmul.bf16.vlgmr.msrb.gmra.mxu3 %v877_v63 }
 0x104   :  { %v872_v0 = vpop.f32.mrf.mxu0 }
 0x155   :  { %v1019_v5 = vpop.f32.mrf.mxu1 }
 0x156   :  { %v1020_v13 = vadd.f32 %v1877_v12, %v1019_v5 }
 0x15d   :  { %v1021_v3 = vpop.f32.mrf.mxu1 }
 0x186   :  { %v1032_v14 = vpop.f32.mrf.mxu3 }
 0x187   :  { %v1033_v15 = vadd.f32 %v1032_v14, %v1020_v13 }
 0x189   :  { %v1036_v16 = vmax.f32 %v1033_v15, 0.0 }
 0x18b   :  { %v1037_v17 = vpack.c.bf16 %v1036_v16, %v1036_v16 }
 0x18d   :  { %1114 = vmatmul.bf16.vlgmr.msra.gmra.mxu0 %v1037_v17 }
 0x18e   :  { %v1034_v18 = vpop.f32.mrf.mxu3 }
 0x20a   :  { %v1115_v22 = vpop.f32.mrf.mxu0 }
 0x20b   :  { %v1116_v23 = vadd.f32 %v1878_v21, %v1115_v22 }
 0x20d   :  { %v1119_v24 = vmax.f32 %v1116_v23, 0.0 }
 0x20f   :  { %v1120_v25 = vpack.c.bf16 %v1119_v24, %v1119_v24 }
 0x211   :  { %1197 = vmatmul.bf16.vlgmr.msra.gmra.mxu2 %v1120_v25 }
 0x212   :  { %v1117_v26 = vpop.f32.mrf.mxu0 }
 0x294   :  { %v1198_v28 = vpop.f32.mrf.mxu2 }
 0x295   :  { %v1199_v29 = vadd.f32 %v1879_v27, %v1198_v28 }
 0x297   :  { %1202 = vmax.xlane.f32.xlu0 %v1199_v29 }
 0x29c   :  { %v1200_v31 = vpop.f32.mrf.mxu2 }
 0x30a   :  { %v1203_v32 = vpop.xlane.xlu0 %1202 }
 0x30b   :  { %v1204_v33 = vsub.f32 %v1199_v29, %v1203_v32 }
 0x30d   :  { %v1205_v34 = vmul.f32 1.442695, %v1204_v33 }
 0x30f   :  { %1880 = vpow2.f32 %v1205_v34 }
 0x315   :  { %v1881_v35 = vpop.eup %1880 }
 0x316   :  { %1207 = vadd.xlane.f32.xlu0 %v1881_v35 }
 0x389   :  { %v1208_v36 = vpop.xlane.xlu0 %1207 }
 0x38a   :  { %1882 = vlog2.f32 %v1208_v36 }
 0x390   :  { %v1883_v38 = vpop.eup %1882 }
 0x391   :  { %v1210_v39 = vmul.f32 0.6931472, %v1883_v38 }
 0x393   :  { %v1211_v40 = vsub.f32 %v1204_v33, %v1210_v39 }
 0x395   :  { %v1212_v41 = vpack.c.bf16 %v1211_v40, %v1211_v40 }
 0x397   :  { %1213 = vst [vmem:[%s2687_s9] sm:$0xf] %v1212_v41 }
 0x398   :  { %1218 = vsyncpa [#allocation3], 1 }
 0x399   :  { %1219 = vsyncpa [#allocation5], 1 }

</bundles_post_ra>
